<compile_context>
chip_gen: v6e
topology: v6e:2x2x1
jax: 0.10.0
libtpu: 0.0.40
codegen_flags: <defaults>
</compile_context>

<pallas_src>
import functools
import math

import jax
import jax.numpy as jnp
from jax.experimental import pallas as pl
from jax.experimental.pallas import tpu as pltpu


# ----------------------------------------------------------------------------- PE table ------
def make_sinusoidal_pe(max_len: int, d_model: int, dtype=jnp.float32) -> jnp.ndarray:
    """Sinusoidal positional-encoding buffer of shape [1, max_len, d_model] (build once)."""
    position = jnp.arange(max_len, dtype=jnp.float32)[:, None]                        # [L, 1]
    div_term = jnp.exp(
        jnp.arange(0, d_model, 2, dtype=jnp.float32) * (-math.log(10000.0) / d_model)
    )                                                                                  # [ceil(D/2)]
    pe = jnp.zeros((max_len, d_model), dtype=jnp.float32)
    pe = pe.at[:, 0::2].set((jnp.sin(position * div_term))[:, : (d_model + 1) // 2])
    pe = pe.at[:, 1::2].set((jnp.cos(position * div_term))[:, : d_model // 2])
    return pe[None].astype(dtype)                                                      # [1, L, D]


# ----------------------------------------------------------------------------- tiling --------
def _divisor_tile(n: int, cap: int, pref: int = 8) -> int:
    """Largest divisor of n that is <= cap, preferring multiples of `pref` (sublane-dense)."""
    cap = max(1, min(cap, n))
    best_any, best_pref = 1, None
    for t in range(1, cap + 1):
        if n % t == 0:
            best_any = t
            if t % pref == 0:
                best_pref = t
    return best_pref if best_pref is not None else best_any


def _choose_seq_tile(B: int, S: int, D: int, bytes_per_elem_all_streams: int) -> int:
    # Budget counts every per-step tile (x + pe + out [+ bits]) and double buffering.
    budget = 6 << 20
    per_row = max(1, D * bytes_per_elem_all_streams * 2)      # x2: BlockSpec double-buffers
    ts = _divisor_tile(S, max(1, budget // per_row), pref=8)
    # v7x megacore: make sure the parallel grid has >= 2 steps when the shape allows it.
    if B * (S // ts) < 2 and ts > 1:
        ts = _divisor_tile(S, max(1, ts // 2), pref=8)
    return ts


# ----------------------------------------------------------------------------- kernels -------
def _pe_add_kernel(x_ref, pe_ref, o_ref):
    o_ref[...] = x_ref[...] + pe_ref[...]


def _pe_add_dropout_prng_kernel(seed_ref, x_ref, pe_ref, o_ref, *, drop_threshold, scale):
    # Distinct stream per grid step: seed + flat program index.
    step = pl.program_id(0) * pl.num_programs(1) + pl.program_id(1)
    pltpu.prng_seed(seed_ref[0] + step)
    bits = pltpu.prng_random_bits(x_ref.shape)
    if bits.dtype != jnp.int32:                      # be robust to int32/uint32 return dtype
        bits = pltpu.bitcast(bits, jnp.int32)
    y = x_ref[...] + pe_ref[...]
    # Signed-domain threshold: P(bits >= thr) == 1 - p for uniform 32-bit words.
    keep = bits >= jnp.int32(drop_threshold)
    o_ref[...] = jnp.where(keep, y * jnp.asarray(scale, y.dtype), jnp.zeros_like(y))


def _pe_add_dropout_bits_kernel(x_ref, pe_ref, bits_ref, o_ref, *, drop_threshold, scale):
    y = x_ref[...] + pe_ref[...]
    keep = bits_ref[...].astype(jnp.int32) >= drop_threshold     # uint8 bits, 1/256 granularity
    o_ref[...] = jnp.where(keep, y * jnp.asarray(scale, y.dtype), jnp.zeros_like(y))


# ----------------------------------------------------------------------------- wrapper -------
def positional_encoding(x, pe_table, *, p_drop=0.1, training=False, rng_key=None,
                        rng_impl="kernel"):
    """dropout(x + pe[:seq_len]) with inverted-dropout scaling (identity in eval mode).

    Args:
      x:        [batch, seq_len, d_model]
      pe_table: [1, max_len, d_model] buffer from make_sinusoidal_pe (ideally already in x.dtype)
      rng_impl: "kernel"   -> in-kernel TPU PRNG (fastest; no extra HBM traffic)
                "streamed" -> uint8 random bits generated in the wrapper (portable fallback)
    """
    B, S, D = x.shape
    assert pe_table.ndim == 3 and pe_table.shape[0] == 1
    assert pe_table.shape[1] >= S and pe_table.shape[2] == D
    pe = pe_table if pe_table.dtype == x.dtype else pe_table.astype(x.dtype)

    use_dropout = bool(training) and float(p_drop) > 0.0
    itemsize = jnp.dtype(x.dtype).itemsize
    stream_bytes = 3 * itemsize + (1 if (use_dropout and rng_impl == "streamed") else 0)
    TS = _choose_seq_tile(B, S, D, stream_bytes)
    grid = (B, S // TS)

    # index_maps take (*grid_ids, *scalar_prefetch_refs); the trailing *_ absorbs the seed ref.
    x_spec = pl.BlockSpec((1, TS, D), lambda b, s, *_: (b, s, 0))
    pe_spec = pl.BlockSpec((1, TS, D), lambda b, s, *_: (0, s, 0))
    out_spec = pl.BlockSpec((1, TS, D), lambda b, s, *_: (b, s, 0))
    out_shape = jax.ShapeDtypeStruct((B, S, D), x.dtype)
    cparams = pltpu.CompilerParams(dimension_semantics=("parallel", "parallel"))

    if not use_dropout:
        gs = pltpu.PrefetchScalarGridSpec(
            num_scalar_prefetch=0, grid=grid, in_specs=[x_spec, pe_spec], out_specs=out_spec)
        return pl.pallas_call(_pe_add_kernel, out_shape=out_shape,
                              grid_spec=gs, compiler_params=cparams)(x, pe)

    if rng_key is None:
        raise ValueError("training-mode dropout requires an explicit rng_key")
    scale = 1.0 / (1.0 - float(p_drop))

    if rng_impl == "kernel":
        thr = int(round(float(p_drop) * 2.0 ** 32)) - 2 ** 31
        thr = max(-(2 ** 31), min(thr, 2 ** 31 - 1))
        seed = jax.random.randint(rng_key, (1,), 0, 2 ** 31 - 1, dtype=jnp.int32)
        kernel = functools.partial(_pe_add_dropout_prng_kernel,
                                   drop_threshold=thr, scale=scale)
        gs = pltpu.PrefetchScalarGridSpec(
            num_scalar_prefetch=1, grid=grid, in_specs=[x_spec, pe_spec], out_specs=out_spec)
        return pl.pallas_call(kernel, out_shape=out_shape,
                              grid_spec=gs, compiler_params=cparams)(seed, x, pe)

    # Portable fallback: stream uint8 random bits (1 byte/elem, 4x less than uint32 bits).
    thr8 = max(0, min(int(round(float(p_drop) * 256.0)), 255))
    bits = jax.random.bits(rng_key, (B, S, D), dtype=jnp.uint8)
    kernel = functools.partial(_pe_add_dropout_bits_kernel, drop_threshold=thr8, scale=scale)
    bits_spec = pl.BlockSpec((1, TS, D), lambda b, s, *_: (b, s, 0))
    gs = pltpu.PrefetchScalarGridSpec(
        num_scalar_prefetch=0, grid=grid, in_specs=[x_spec, pe_spec, bits_spec],
        out_specs=out_spec)
    return pl.pallas_call(kernel, out_shape=out_shape,
                          grid_spec=gs, compiler_params=cparams)(x, pe, bits)


# ----------------------------------------------------------------------------- demo ----------
if __name__ == "__main__":
    batch, seq_len, d_model, max_len = 2, 8, 32, 64
    p = 0.1

    key = jax.random.PRNGKey(0)
    x_key, drop_key = jax.random.split(key)
    x = jax.random.normal(x_key, (batch, seq_len, d_model), dtype=jnp.float32)
    pe_table = make_sinusoidal_pe(max_len, d_model, dtype=x.dtype)   # built once, model dtype

    ref = x + pe_table[:, :seq_len, :]

    # Eval mode (dropout identity) -- matches the PyTorch module in .eval().
    out = jax.block_until_ready(positional_encoding(x, pe_table, p_drop=p, training=False))
    assert out.shape == x.shape and out.dtype == x.dtype
    assert jnp.allclose(out, ref, atol=1e-6), "eval-mode mismatch vs reference"

    # Training mode (inverted dropout). Prefer the in-kernel TPU PRNG; if those primitives are
    # unavailable on this backend (e.g. interpret mode), fall back to the streamed-uint8 kernel.
    try:
        out_train = jax.block_until_ready(
            positional_encoding(x, pe_table, p_drop=p, training=True,
                                rng_key=drop_key, rng_impl="kernel"))
    except Exception:
        out_train = jax.block_until_ready(
            positional_encoding(x, pe_table, p_drop=p, training=True,
                                rng_key=drop_key, rng_impl="streamed"))

    scale = 1.0 / (1.0 - p)
    kept_ok = jnp.abs(out_train - ref * scale) < 1e-5
    dropped = out_train == 0.0
    assert bool(jnp.all(kept_ok | dropped)), "training-mode dropout invariant violated"
    assert bool(jnp.any(dropped)) and bool(jnp.any(~dropped)), "dropout mask degenerate"

    print("KERNEL_OK")
</pallas_src>

<mosaic_0001>
module attributes {stable_mosaic.version = 11 : i64} {
  func.func @_pe_add_kernel(%arg0: i32, %arg1: i32, %arg2: memref<1x8x32xf32, #tpu.memory_space<vmem>>, %arg3: memref<1x8x32xf32, #tpu.memory_space<vmem>>, %arg4: memref<1x8x32xf32, #tpu.memory_space<vmem>>) attributes {dimension_semantics = [#tpu.dimension_semantics<parallel>, #tpu.dimension_semantics<parallel>], iteration_bounds = array<i64: 2, 1>, scalar_prefetch = 0 : i64, scratch_operands = 0 : i64, tpu.core_type = #tpu.core_type<tc>, window_params = [{transform_indices = @transform_0, window_bounds = array<i64: 1, 8, 32>}, {transform_indices = @transform_1, window_bounds = array<i64: 1, 8, 32>}, {transform_indices = @transform_2, window_bounds = array<i64: 1, 8, 32>}]} {
    %c0 = arith.constant 0 : index
    %c0_0 = arith.constant 0 : index
    %c0_1 = arith.constant 0 : index
    %0 = vector.load %arg2[%c0, %c0_0, %c0_1] : memref<1x8x32xf32, #tpu.memory_space<vmem>>, vector<1x8x32xf32>
    %c0_2 = arith.constant 0 : index
    %c0_3 = arith.constant 0 : index
    %c0_4 = arith.constant 0 : index
    %1 = vector.load %arg3[%c0_2, %c0_3, %c0_4] : memref<1x8x32xf32, #tpu.memory_space<vmem>>, vector<1x8x32xf32>
    %2 = arith.addf %0, %1 : vector<1x8x32xf32>
    %c0_5 = arith.constant 0 : index
    %c0_6 = arith.constant 0 : index
    %c0_7 = arith.constant 0 : index
    %3 = vector.load %arg4[%c0_5, %c0_6, %c0_7] : memref<1x8x32xf32, #tpu.memory_space<vmem>>, vector<1x8x32xf32>
    tpu.vector_store %arg4[%c0_5, %c0_6, %c0_7], %2 {strides = array<i32>} : memref<1x8x32xf32, #tpu.memory_space<vmem>>, vector<1x8x32xf32>,
    return
  }
  func.func @transform_0(%arg0: i32, %arg1: i32) -> (i32, i32, i32) {
    %c0_i32 = arith.constant 0 : i32
    %c0_i32_0 = arith.constant 0 : i32
    return %arg0, %arg1, %c0_i32 : i32, i32, i32
  }
  func.func @transform_1(%arg0: i32, %arg1: i32) -> (i32, i32, i32) {
    %c0_i32 = arith.constant 0 : i32
    %c0_i32_0 = arith.constant 0 : i32
    %c0_i32_1 = arith.constant 0 : i32
    return %c0_i32, %arg1, %c0_i32_0 : i32, i32, i32
  }
  func.func @transform_2(%arg0: i32, %arg1: i32) -> (i32, i32, i32) {
    %c0_i32 = arith.constant 0 : i32
    %c0_i32_0 = arith.constant 0 : i32
    return %arg0, %arg1, %c0_i32 : i32, i32, i32
  }
}

</mosaic_0001>

<bundles_post_ra>
// kernel: tpu_custom_call.1
= control target key start
LH: loop header
LB: loop body
LE: loop exit
PB: predicated region body
PF: predicated region fallthrough
CT: control target
= control target key end

     0   :  { %7 = vsyncpa [#allocation3], 0  ;;  %s550_s0 = inlined_call_operand.vmem [shape: f32[2,8,32], index: 0, kind: input, shape index: {}]   ;;  %s551_s1 = inlined_call_operand.vmem [shape: f32[1,64,32], index: 1, kind: input, shape index: {}]   ;;  %s552_s2 = inlined_call_operand.hbm [shape: f32[2,8,32], index: 2, kind: output, shape index: {}]  }
   0x1   :  { %9 = vsyncpa [#allocation3 + $0x1], 0  ;;  %s448_s9 = smov 0   ;;  %s450_s10 = smov 0  }
   0x2   :  { %s452_s11 = smov 0   ;;  %s454_s12 = smov 0  }
   0x3   :  { %s456_s13 = smov 0   ;;  %s458_s14 = smov 0  }
   0x4 LB: > { %s287_s15 = sadd.s32 4294967295, %s430_s14   ;;  %s288_s16 = sadd.s32 4294967294, %s430_s14   ;;  %s430_s14 = sphi %s458_s14, %s15_s14   ;;  %s426_s13 = sphi %s456_s13, %s559_s13   ;;  %s422_s12 = sphi %s454_s12, %s558_s12   ;;  %s418_s11 = sphi %s452_s11, %s557_s11   ;;  %s414_s10 = sphi %s450_s10, %s556_s10   ;;  %s410_s9 = sphi %s448_s9, %s555_s9  }
   0x5   : > { %s27_s17 = sadd.s32 1, %s426_s13  ;;  %s90_s18 = sadd.s32 1, %s418_s11 }
   0x6   : > { %p29_p0 = scmp.ge.s32.totalorder %s27_s17, 2  ;;  %p100_p1 = scmp.ne.s32.totalorder %s418_s11, %s414_s10 }
   0x7   : > { %p101_p2 = scmp.eq.s32.totalorder %s287_s15, 1  ;;  %p106_p3 = scmp.ne.s32.totalorder %s414_s10, %s410_s9 }
   0x8   : > { %s561_s17 = smov (%p29_p0, %s27_s17), 0  ;;  %p107_p5 = scmp.eq.s32.totalorder %s288_s16, 1 }
   0x9   : > { %p488_p4 = por %p101_p2, %p100_p1  ;;  %s85_s20 = ssub.s32 %s426_s13, %s561_s17 }
   0xa   : > { %p292_p6 = scmp.ge.s32.totalorder %s430_s14, 1  ;;  %p88_p7 = scmp.eq.s32.totalorder %s85_s20, 0 }
   0xb   : > { %p495_p8 = por %p107_p5, %p106_p3  ;;  %p142_p9 = scmp.lt.s32.totalorder %s430_s14, 3 }
   0xc   : > { %s501_s22 = scalar_select %p88_p7, %s418_s11, %s90_s18  }
   0xd   : > { %p143_p10 = pnand %p292_p6, %p142_p9 }
   0xe   : > { %s167_s23 = sand.u32 (!%p143_p10), 1, %s414_s10   ;;  %p170_p11 = scmp.lt.s32.totalorder (!%p143_p10), %s422_s12, 1 }
   0xf   : > { %146 = sbr.rel (%p143_p10) target bundleno = 42 (0x2a), region = 28  ;;  %s293_s24 = sshll.u32 (!%p143_p10), %s167_s23, 3 }
  0x10   : > { %s296_s26 = sshll.u32 (!%p143_p10), %s422_s12, 7  ;;  %s169_s30 = scalar_lea.vmem (!%p143_p10), [#allocation2], %s293_s24 }
  0x11   : > { %s201_s3 = sshll.u32 (!%p143_p10), %s169_s30, 4  ;;  %s199_s15 = scalar_lea.hbm (!%p143_p10), %s552_s2, %s296_s26  ;;  %s202_s3 = int_to_ptr.vmem [resolvable:$true] %s201_s3 }
  0x12   : > { %s354_s16 = scalar_lea.vmem (!%p143_p10), %s202_s3, 128  ;;  %s432_s18 = smov (!%p143_p10), [#allocation2]  }
  0x13   : > { %p355_p12 = scmp.ne.s32.totalorder (!%p143_p10), %s202_s3, %s354_s16  ;;  %s358_s20 = sshll.u32 (!%p143_p10), %s432_s18, 4  ;;  %s359_s20 = int_to_ptr.vmem [resolvable:$false] %s358_s20 }
  0x14   : > { %s171_s25 = scalar_select %p170_p11, %s422_s12, 1  ;;  %v182_v0 = vld [vmem:[%s551_s1] sm:$0xff]  ;;  %vm184_vm0 = vcmask 261120  }
  0x15   : > { %s187_s12 = scalar_lea.sflag [#allocation3], %s167_s23  ;;  %p356_p13 = pnand %p355_p12, %p488_p4 }
  0x16   : > { %s294_s27 = sshll.u32 %s171_s25, 3  ;;  %s360_s24 = scalar_lea.vmem %s359_s20, 256 }
  0x17   : > { %s176_s6 = scalar_lea.vmem %s550_s0, %s294_s27  ;;  %p357_p0 = pneg %p356_p13 }
  0x18   : > { %v181_v1 = vld [vmem:[%s176_s6] sm:$0xff]  ;;  %p361_p1 = scmp.lt.s32.totalorder %s202_s3, %s359_s20  ;;  %p362_p2 = scmp.lt.s32.totalorder %s360_s24, %s354_s16 }
  0x19   : > { %v183_v2 = vadd.f32 %v182_v0, %v181_v1 }
  0x1a   : > { %p363_p3 = por %p362_p2, %p361_p1 }
  0x1b   : > { %185 = vst.msk [vmem:[%s169_s30] sm:$0xff] %vm184_vm0, %v183_v2 }
  0x1c   : > { %p364_p5 = pnand %p363_p3, %p357_p0 }
  0x1e   : > { %367 = shalt.err (!%p364_p5)
}
  0x1f   : > { %s368_s25 = scalar_lea.hbm %s199_s15, 128  ;;  %s372_s27 = scalar_lea.hbm %s552_s2, 256 }
  0x20   : > { %p369_p6 = scmp.ne.s32.totalorder %s199_s15, %s368_s25  ;;  %p373_p10 = scmp.lt.s32.totalorder %s199_s15, %s552_s2 }
  0x21   : > { %p374_p11 = scmp.lt.s32.totalorder %s372_s27, %s368_s25 }
  0x22   : > { %p370_p7 = pnand %p369_p6, %p488_p4 }
  0x23   : > { %p375_p12 = por %p374_p11, %p373_p10 }
  0x24   : > { %p371_p9 = pneg %p370_p7 }
  0x26   : > { %p376_p13 = pnand %p375_p12, %p371_p9 }
  0x28   : > { %379 = shalt.err (!%p376_p13)
}
  0x29   : > { %299 = dma.vmem_to_hbm [thread:$0]  (%p488_p4), %s202_s3, 128, %s199_s15, %s187_s12  }
  0x2a PF: > { %p305_p0 = scmp.ge.s32.totalorder %s430_s14, 2  ;;  %s213_s30 = sand.u32 1, %s410_s9  }
  0x2b   : > { %s214_s4 = scalar_lea.sflag [#allocation3], %s213_s30 }
  0x2c   : > { %p302_p1 = pnand %p305_p0, %p495_p8 }
  0x2e   : > { %p303_p2 = pneg %p302_p1 }
  0x30   : > { %405 = dma.done.wait (%p303_p2), %s214_s4, 128  }
  0x31   : > { %407 = vsyncadd (%p303_p2), %s214_s4, 4294967168  ;;  %s15_s14 = sadd.s32 1, %s430_s14   ;;  %s555_s9 = smov %s414_s10 }
  0x32   : > { %p12_p3 = scmp.ge.s32.totalorder %s15_s14, 4   ;;  %s556_s10 = smov %s418_s11 }
  0x33   : > { %s557_s11 = smov %s501_s22  ;;  %s558_s12 = smov %s426_s13 }
  0x34   : > { %s559_s13 = smov %s561_s17  ;;  %14 = sbr.rel (!%p12_p3) target bundleno = 4 (0x4), region = 66 }
  0x39   :  { %219 = vsyncpa [#allocation3], 1 }
  0x3a   :  { %221 = vsyncpa [#allocation3 + $0x1], 1 }

</bundles_post_ra>
